<compile_context>
chip_gen: v6e
topology: v6e:2x2x1
jax: 0.10.0
libtpu: 0.0.40
codegen_flags: <defaults>
</compile_context>

<pallas_src>
import functools

import jax
import jax.numpy as jnp
from jax.experimental import pallas as pl
from jax.experimental.pallas import tpu as pltpu


HIDDEN = 50        # hidden width fixed by the module (fc1/fc2 -> 50 features)
HIDDEN_PAD = 128   # lane-dense padded hidden width


def _round_up(n, m):
    return ((n + m - 1) // m) * m


def _mlp_kernel(x_ref, w1_ref, b1_ref, w2_ref, b2_ref, w3_ref, b3_ref, o_ref):
    # Fully fused forward for one batch tile.
    x = x_ref[...]
    h1 = jnp.dot(x, w1_ref[...], preferred_element_type=jnp.float32) + b1_ref[...]
    h1 = jnp.maximum(h1, 0.0)
    h2 = jnp.dot(h1, w2_ref[...], preferred_element_type=jnp.float32) + b2_ref[...]
    h2 = jnp.maximum(h2, 0.0)
    out = jnp.dot(h2, w3_ref[...], preferred_element_type=jnp.float32) + b3_ref[...]
    o_ref[...] = out.astype(o_ref.dtype)


@functools.partial(jax.jit, static_argnames=("block_b",))
def simple_table_classifier(x, params, *, block_b=1024):
    """x: [B, features_size] float32.

    params: dict of w1[in,50], b1[1,50], w2[50,50], b2[1,50], w3[50,out], b3[1,out]
    (weights stored as [in, out], i.e. transpose of PyTorch's [out, in]).
    """
    B, F = x.shape
    h = params["w1"].shape[1]
    out_dim = params["w3"].shape[1]
    hp = HIDDEN_PAD
    pad_h = hp - h

    # ---- lane-dense padding of the hidden dim (50 -> 128), exact numerics ----
    w1 = jnp.pad(params["w1"], ((0, 0), (0, pad_h)))
    b1 = jnp.pad(params["b1"], ((0, 0), (0, pad_h)))
    w2 = jnp.pad(params["w2"], ((0, pad_h), (0, pad_h)))
    b2 = jnp.pad(params["b2"], ((0, 0), (0, pad_h)))
    w3 = jnp.pad(params["w3"], ((0, pad_h), (0, 0)))
    b3 = params["b3"]

    # ---- batch tiling: big tiles, zero-pad ragged tail, slice result back ----
    bb = min(block_b, _round_up(B, 8))        # don't over-pad tiny batches
    Bp = _round_up(B, bb)
    xp = jnp.pad(x, ((0, Bp - B), (0, 0))) if Bp != B else x

    grid = (Bp // bb,)
    out = pl.pallas_call(
        _mlp_kernel,
        out_shape=jax.ShapeDtypeStruct((Bp, out_dim), jnp.float32),
        grid_spec=pltpu.PrefetchScalarGridSpec(
            num_scalar_prefetch=0,
            grid=grid,
            in_specs=[
                # activations: streamed / tiled over batch
                pl.BlockSpec((bb, F), lambda i: (i, 0)),
                # weights / biases: constant index -> VMEM-resident across steps
                pl.BlockSpec((F, hp), lambda i: (0, 0)),
                pl.BlockSpec((1, hp), lambda i: (0, 0)),
                pl.BlockSpec((hp, hp), lambda i: (0, 0)),
                pl.BlockSpec((1, hp), lambda i: (0, 0)),
                pl.BlockSpec((hp, out_dim), lambda i: (0, 0)),
                pl.BlockSpec((1, out_dim), lambda i: (0, 0)),
            ],
            out_specs=pl.BlockSpec((bb, out_dim), lambda i: (i, 0)),
        ),
        compiler_params=pltpu.CompilerParams(
            dimension_semantics=("parallel",),   # lets v7x shard batch over 2 TCs
        ),
    )(xp, w1, b1, w2, b2, w3, b3)

    return out[:B] if Bp != B else out


def init_params(key, features_size, out_dim):
    """Deterministic init mimicking nn.Linear's U(-1/sqrt(fan_in), 1/sqrt(fan_in))."""
    def linear_init(k, fan_in, fan_out):
        kw, kb = jax.random.split(k)
        bound = 1.0 / jnp.sqrt(fan_in)
        w = jax.random.uniform(kw, (fan_in, fan_out), jnp.float32, -bound, bound)
        b = jax.random.uniform(kb, (1, fan_out), jnp.float32, -bound, bound)
        return w, b

    k1, k2, k3 = jax.random.split(key, 3)
    w1, b1 = linear_init(k1, features_size, HIDDEN)
    w2, b2 = linear_init(k2, HIDDEN, HIDDEN)
    w3, b3 = linear_init(k3, HIDDEN, out_dim)
    return {"w1": w1, "b1": b1, "w2": w2, "b2": b2, "w3": w3, "b3": b3}


def reference_forward(x, p):
    h1 = jnp.maximum(x @ p["w1"] + p["b1"], 0.0)
    h2 = jnp.maximum(h1 @ p["w2"] + p["b2"], 0.0)
    return h2 @ p["w3"] + p["b3"]


if __name__ == "__main__":
    key = jax.random.PRNGKey(0)
    k_params, k_x, k_x2 = jax.random.split(key, 3)

    batch = 8
    features_size = 32
    out_dim = 8

    params = init_params(k_params, features_size, out_dim)

    # main small-shape test
    x = jax.random.normal(k_x, (batch, features_size), jnp.float32)
    out = jax.block_until_ready(simple_table_classifier(x, params))
    ref = reference_forward(x, params)
    assert out.shape == (batch, out_dim)
    assert jnp.allclose(out, ref, atol=1e-5, rtol=1e-5), "mismatch vs JAX reference"

    # ragged-batch test: exercises the pad + multi-step-grid + slice path
    x2 = jax.random.normal(k_x2, (20, features_size), jnp.float32)
    out2 = jax.block_until_ready(simple_table_classifier(x2, params, block_b=8))
    ref2 = reference_forward(x2, params)
    assert out2.shape == (20, out_dim)
    assert jnp.allclose(out2, ref2, atol=1e-5, rtol=1e-5), "ragged batch mismatch"

    print("KERNEL_OK")
</pallas_src>

<mosaic_0001>
module attributes {stable_mosaic.version = 11 : i64} {
  func.func @_mlp_kernel(%arg0: i32, %arg1: memref<8x32xf32, #tpu.memory_space<vmem>>, %arg2: memref<32x128xf32, #tpu.memory_space<vmem>>, %arg3: memref<1x128xf32, #tpu.memory_space<vmem>>, %arg4: memref<128x128xf32, #tpu.memory_space<vmem>>, %arg5: memref<1x128xf32, #tpu.memory_space<vmem>>, %arg6: memref<128x8xf32, #tpu.memory_space<vmem>>, %arg7: memref<1x8xf32, #tpu.memory_space<vmem>>, %arg8: memref<8x8xf32, #tpu.memory_space<vmem>>) attributes {dimension_semantics = [#tpu.dimension_semantics<parallel>], iteration_bounds = array<i64: 1>, scalar_prefetch = 0 : i64, scratch_operands = 0 : i64, tpu.core_type = #tpu.core_type<tc>, window_params = [{transform_indices = @transform_0, window_bounds = array<i64: 8, 32>}, {pipeline_mode = #tpu.pipeline_mode<synchronous>, transform_indices = @transform_1, window_bounds = array<i64: 32, 128>}, {pipeline_mode = #tpu.pipeline_mode<synchronous>, transform_indices = @transform_2, window_bounds = array<i64: 1, 128>}, {pipeline_mode = #tpu.pipeline_mode<synchronous>, transform_indices = @transform_3, window_bounds = array<i64: 128, 128>}, {pipeline_mode = #tpu.pipeline_mode<synchronous>, transform_indices = @transform_4, window_bounds = array<i64: 1, 128>}, {pipeline_mode = #tpu.pipeline_mode<synchronous>, transform_indices = @transform_5, window_bounds = array<i64: 128, 8>}, {pipeline_mode = #tpu.pipeline_mode<synchronous>, transform_indices = @transform_6, window_bounds = array<i64: 1, 8>}, {transform_indices = @transform_7, window_bounds = array<i64: 8, 8>}]} {
    %c0 = arith.constant 0 : index
    %c0_0 = arith.constant 0 : index
    %0 = vector.load %arg1[%c0, %c0_0] : memref<8x32xf32, #tpu.memory_space<vmem>>, vector<8x32xf32>
    %c0_1 = arith.constant 0 : index
    %c0_2 = arith.constant 0 : index
    %1 = vector.load %arg2[%c0_1, %c0_2] : memref<32x128xf32, #tpu.memory_space<vmem>>, vector<32x128xf32>
    %cst = arith.constant dense<0.000000e+00> : vector<8x128xf32>
    %2 = tpu.matmul %0, %1, %cst {dimension_numbers = #tpu.dot_dimension_numbers<[1], [0], [0], [1], [0, 0, 1, 1], [], []>} : vector<8x32xf32>, vector<32x128xf32>, vector<8x128xf32> -> vector<8x128xf32>
    %c0_3 = arith.constant 0 : index
    %c0_4 = arith.constant 0 : index
    %3 = vector.load %arg3[%c0_3, %c0_4] : memref<1x128xf32, #tpu.memory_space<vmem>>, vector<1x128xf32>
    %4 = vector.broadcast %3 : vector<1x128xf32> to vector<8x128xf32>
    %5 = arith.addf %2, %4 : vector<8x128xf32>
    %cst_5 = arith.constant 0.000000e+00 : f32
    %6 = vector.broadcast %cst_5 : f32 to vector<8x128xf32>
    %7 = arith.maximumf %5, %6 : vector<8x128xf32>
    %c0_6 = arith.constant 0 : index
    %c0_7 = arith.constant 0 : index
    %8 = vector.load %arg4[%c0_6, %c0_7] : memref<128x128xf32, #tpu.memory_space<vmem>>, vector<128x128xf32>
    %cst_8 = arith.constant dense<0.000000e+00> : vector<8x128xf32>
    %9 = tpu.matmul %7, %8, %cst_8 {dimension_numbers = #tpu.dot_dimension_numbers<[1], [0], [0], [1], [0, 0, 1, 1], [], []>} : vector<8x128xf32>, vector<128x128xf32>, vector<8x128xf32> -> vector<8x128xf32>
    %c0_9 = arith.constant 0 : index
    %c0_10 = arith.constant 0 : index
    %10 = vector.load %arg5[%c0_9, %c0_10] : memref<1x128xf32, #tpu.memory_space<vmem>>, vector<1x128xf32>
    %11 = vector.broadcast %10 : vector<1x128xf32> to vector<8x128xf32>
    %12 = arith.addf %9, %11 : vector<8x128xf32>
    %cst_11 = arith.constant 0.000000e+00 : f32
    %13 = vector.broadcast %cst_11 : f32 to vector<8x128xf32>
    %14 = arith.maximumf %12, %13 : vector<8x128xf32>
    %c0_12 = arith.constant 0 : index
    %c0_13 = arith.constant 0 : index
    %15 = vector.load %arg6[%c0_12, %c0_13] : memref<128x8xf32, #tpu.memory_space<vmem>>, vector<128x8xf32>
    %cst_14 = arith.constant dense<0.000000e+00> : vector<8x8xf32>
    %16 = tpu.matmul %14, %15, %cst_14 {dimension_numbers = #tpu.dot_dimension_numbers<[1], [0], [0], [1], [0, 0, 1, 1], [], []>} : vector<8x128xf32>, vector<128x8xf32>, vector<8x8xf32> -> vector<8x8xf32>
    %c0_15 = arith.constant 0 : index
    %c0_16 = arith.constant 0 : index
    %17 = vector.load %arg7[%c0_15, %c0_16] : memref<1x8xf32, #tpu.memory_space<vmem>>, vector<1x8xf32>
    %18 = vector.broadcast %17 : vector<1x8xf32> to vector<8x8xf32>
    %19 = arith.addf %16, %18 : vector<8x8xf32>
    %c0_17 = arith.constant 0 : index
    %c0_18 = arith.constant 0 : index
    %20 = vector.load %arg8[%c0_17, %c0_18] : memref<8x8xf32, #tpu.memory_space<vmem>>, vector<8x8xf32>
    tpu.vector_store %arg8[%c0_17, %c0_18], %19 {strides = array<i32>} : memref<8x8xf32, #tpu.memory_space<vmem>>, vector<8x8xf32>,
    return
  }
  func.func @transform_0(%arg0: i32) -> (i32, i32) {
    %c0_i32 = arith.constant 0 : i32
    %c0_i32_0 = arith.constant 0 : i32
    return %arg0, %c0_i32 : i32, i32
  }
  func.func @transform_1(%arg0: i32) -> (i32, i32) {
    %c0_i32 = arith.constant 0 : i32
    %c0_i32_0 = arith.constant 0 : i32
    %c0_i32_1 = arith.constant 0 : i32
    return %c0_i32, %c0_i32_0 : i32, i32
  }
  func.func @transform_2(%arg0: i32) -> (i32, i32) {
    %c0_i32 = arith.constant 0 : i32
    %c0_i32_0 = arith.constant 0 : i32
    %c0_i32_1 = arith.constant 0 : i32
    return %c0_i32, %c0_i32_0 : i32, i32
  }
  func.func @transform_3(%arg0: i32) -> (i32, i32) {
    %c0_i32 = arith.constant 0 : i32
    %c0_i32_0 = arith.constant 0 : i32
    %c0_i32_1 = arith.constant 0 : i32
    return %c0_i32, %c0_i32_0 : i32, i32
  }
  func.func @transform_4(%arg0: i32) -> (i32, i32) {
    %c0_i32 = arith.constant 0 : i32
    %c0_i32_0 = arith.constant 0 : i32
    %c0_i32_1 = arith.constant 0 : i32
    return %c0_i32, %c0_i32_0 : i32, i32
  }
  func.func @transform_5(%arg0: i32) -> (i32, i32) {
    %c0_i32 = arith.constant 0 : i32
    %c0_i32_0 = arith.constant 0 : i32
    %c0_i32_1 = arith.constant 0 : i32
    return %c0_i32, %c0_i32_0 : i32, i32
  }
  func.func @transform_6(%arg0: i32) -> (i32, i32) {
    %c0_i32 = arith.constant 0 : i32
    %c0_i32_0 = arith.constant 0 : i32
    %c0_i32_1 = arith.constant 0 : i32
    return %c0_i32, %c0_i32_0 : i32, i32
  }
  func.func @transform_7(%arg0: i32) -> (i32, i32) {
    %c0_i32 = arith.constant 0 : i32
    %c0_i32_0 = arith.constant 0 : i32
    return %arg0, %c0_i32 : i32, i32
  }
}

</mosaic_0001>

<bundles_post_ra>
// kernel: simple_table_classifier.1
= control target key start
LH: loop header
LB: loop body
LE: loop exit
PB: predicated region body
PF: predicated region fallthrough
CT: control target
= control target key end

     0   :  { %v466_v1 = vmov 0.0   ;;  %vm467_vm0 = vmmov 0   ;;  %vm39_vm1 = vcmask 261120   ;;  %s674_s0 = inlined_call_operand.vmem [shape: f32[8,32], index: 0, kind: input, shape index: {}]   ;;  %s675_s1 = inlined_call_operand.vmem [shape: f32[32,128], index: 1, kind: input, shape index: {}]   ;;  %s676_s2 = inlined_call_operand.vmem [shape: f32[1,128], index: 2, kind: input, shape index: {}]   ;;  %s677_s3 = inlined_call_operand.vmem [shape: f32[128,128], index: 3, kind: input, shape index: {}]   ;;  %s678_s4 = inlined_call_operand.vmem [shape: f32[1,128], index: 4, kind: input, shape index: {}]   ;;  %s679_s5 = inlined_call_operand.vmem [shape: f32[128,8], index: 5, kind: input, shape index: {}]   ;;  %s680_s6 = inlined_call_operand.vmem [shape: f32[1,8], index: 6, kind: input, shape index: {}]   ;;  %s681_s7 = inlined_call_operand.hbm [shape: f32[8,8], index: 7, kind: output, shape index: {}]  }
   0x1   :  { %v31_v0 = vld [vmem:[%s675_s1 + $0x18] sm:$0xff]  ;;  %360 = vmatprep.subr.mxu0 %v466_v1  ;;  %v30_v2 = vld [vmem:[%s675_s1 + $0x10] sm:$0xff]  ;;  %368 = vmatprep.mubr.msk.f32.mxu0 %vm467_vm0, %v466_v1  ;;  %v29_v5 = vld [vmem:[%s675_s1 + $0x8] sm:$0xff] }
   0x2   :  { %v129_v3 = vld [vmem:[%s677_s3 + $0x78] sm:$0xff]  ;;  %361 = vmatpush3.msra.mxu0 %v31_v0  ;;  %371 = vmatprep.subr.mxu1 %v466_v1  ;;  %v128_v4 = vld [vmem:[%s677_s3 + $0x70] sm:$0xff]  ;;  %v127_v6 = vld [vmem:[%s677_s3 + $0x68] sm:$0xff] }
   0x3   :  { %362 = vmatprep.subr.mxu0 %v466_v1  ;;  %372 = vmatpush3.msra.mxu1 %v129_v3  ;;  %v28_v7 = vld [vmem:[%s675_s1] sm:$0xff] }
   0x4   :  { %363 = vmatpush3.msra.mxu0 %v30_v2  ;;  %373 = vmatprep.subr.mxu1 %v466_v1  ;;  %v27_v8 = vld [vmem:[%s674_s0] sm:$0xff] }
   0x5   :  { %364 = vmatprep.subr.mxu0 %v466_v1  ;;  %374 = vmatpush3.msra.mxu1 %v128_v4  ;;  %v126_v9 = vld [vmem:[%s677_s3 + $0x60] sm:$0xff] }
   0x6   :  { %365 = vmatpush3.msra.mxu0 %v29_v5  ;;  %375 = vmatprep.subr.mxu1 %v466_v1 }
   0x7   :  { %12 = vsyncpa [#allocation3], 0  ;;  %366 = vmatprep.subr.mxu0 %v466_v1  ;;  %376 = vmatpush3.msra.mxu1 %v127_v6  ;;  %v125_v10 = vld [vmem:[%s677_s3 + $0x58] sm:$0xff]  ;;  %v124_v11 = vld [vmem:[%s677_s3 + $0x50] sm:$0xff]  ;;  %s468_s26 = smov [#allocation2]   ;;  %vm301_vm2 = vcmask 64512  }
   0x8   :  { %367 = vmatpush3.msra.mxu0 %v28_v7  ;;  %377 = vmatprep.subr.mxu1 %v466_v1  ;;  %v123_v12 = vld [vmem:[%s677_s3 + $0x48] sm:$0xff]  ;;  %v122_v13 = vld [vmem:[%s677_s3 + $0x40] sm:$0xff]  ;;  %v121_v14 = vld [vmem:[%s677_s3 + $0x38] sm:$0xff]  ;;  %s309_s27 = sshll.u32 %s468_s26, 4  ;;  %s310_s27 = int_to_ptr.vmem [resolvable:$true] %s309_s27 }
   0x9   :  { %369 = vmatmul.mubr.msk.f32.vlgmr.msra.gmra.mxu0 %vm39_vm1, %v27_v8  ;;  %378 = vmatpush3.msra.mxu1 %v126_v9  ;;  %v120_v15 = vld [vmem:[%s677_s3 + $0x30] sm:$0xff]  ;;  %v119_v16 = vld [vmem:[%s677_s3 + $0x28] sm:$0xff]  ;;  %v118_v17 = vld [vmem:[%s677_s3 + $0x20] sm:$0xff]  ;;  %p449_p1 = scmp.lt.s32.totalorder %s310_s27, %s310_s27 }
   0xa   :  { %379 = vmatprep.subr.mxu1 %v466_v1  ;;  %403 = vmatprep.mubr.msk.f32.mxu1 %vm467_vm0, %v466_v1  ;;  %v117_v18 = vld [vmem:[%s677_s3 + $0x18] sm:$0xff]  ;;  %v116_v19 = vld [vmem:[%s677_s3 + $0x10] sm:$0xff]  ;;  %v115_v20 = vld [vmem:[%s677_s3 + $0x8] sm:$0xff] }
   0xb   :  { %380 = vmatpush3.msra.mxu1 %v125_v10  ;;  %406 = vmatprep.subr.mxu0 %v466_v1  ;;  %v114_v21 = vld [vmem:[%s677_s3] sm:$0xff]  ;;  %v223_v22 = vld [vmem:[%s679_s5 + $0x78] sm:$0xff]  ;;  %v222_v23 = vld [vmem:[%s679_s5 + $0x70] sm:$0xff] }
   0xc   :  { %381 = vmatprep.subr.mxu1 %v466_v1  ;;  %438 = vmatprep.mubr.msk.f32.mxu0 %vm467_vm0, %v466_v1  ;;  %v221_v24 = vld [vmem:[%s679_s5 + $0x68] sm:$0xff]  ;;  %v220_v25 = vld [vmem:[%s679_s5 + $0x60] sm:$0xff]  ;;  %v219_v26 = vld [vmem:[%s679_s5 + $0x58] sm:$0xff] }
   0xd   :  { %382 = vmatpush3.msra.mxu1 %v124_v11  ;;  %407 = vmatpush3.msra.mxu0 %v223_v22  ;;  %v218_v27 = vld [vmem:[%s679_s5 + $0x50] sm:$0xff]  ;;  %v217_v28 = vld [vmem:[%s679_s5 + $0x48] sm:$0xff]  ;;  %v216_v29 = vld [vmem:[%s679_s5 + $0x40] sm:$0xff] }
   0xe   :  { %383 = vmatprep.subr.mxu1 %v466_v1  ;;  %408 = vmatprep.subr.mxu0 %v466_v1  ;;  %v215_v30 = vld [vmem:[%s679_s5 + $0x38] sm:$0xff]  ;;  %v214_v31 = vld [vmem:[%s679_s5 + $0x30] sm:$0xff]  ;;  %v213_v32 = vld [vmem:[%s679_s5 + $0x28] sm:$0xff] }
   0xf   :  { %384 = vmatpush3.msra.mxu1 %v123_v12  ;;  %409 = vmatpush3.msra.mxu0 %v222_v23  ;;  %v212_v33 = vld [vmem:[%s679_s5 + $0x20] sm:$0xff]  ;;  %v211_v34 = vld [vmem:[%s679_s5 + $0x18] sm:$0xff]  ;;  %v210_v40 = vld [vmem:[%s679_s5 + $0x10] sm:$0xff] }
  0x10   :  { %385 = vmatprep.subr.mxu1 %v466_v1  ;;  %410 = vmatprep.subr.mxu0 %v466_v1  ;;  %v317_v35 = vld [vmem:[%s676_s2] ss:$0 sm:$0xff]  ;;  %v209_v41 = vld [vmem:[%s679_s5 + $0x8] sm:$0xff] }
  0x11   :  { %386 = vmatpush3.msra.mxu1 %v122_v13  ;;  %411 = vmatpush3.msra.mxu0 %v221_v24  ;;  %v208_v42 = vld [vmem:[%s679_s5] sm:$0xff]  ;;  %s444_s5 = scalar_lea.vmem %s310_s27, 128 }
  0x12   :  { %387 = vmatprep.subr.mxu1 %v466_v1  ;;  %412 = vmatprep.subr.mxu0 %v466_v1  ;;  %v319_v43 = vld [vmem:[%s678_s4] ss:$0 sm:$0xff]  ;;  %p445_p0 = scmp.ne.s32.totalorder %s310_s27, %s444_s5  ;;  %p450_p2 = scmp.lt.s32.totalorder %s444_s5, %s444_s5 }
  0x13   :  { %388 = vmatpush3.msra.mxu1 %v121_v14  ;;  %413 = vmatpush3.msra.mxu0 %v220_v25  ;;  %v320_v48 = vld [vmem:[%s680_s6] ss:$0 sm:$0xff] }
  0x14   :  { %389 = vmatprep.subr.mxu1 %v466_v1  ;;  %414 = vmatprep.subr.mxu0 %v466_v1  ;;  %p451_p3 = por %p450_p2, %p449_p1 }
  0x15   :  { %390 = vmatpush3.msra.mxu1 %v120_v15  ;;  %415 = vmatpush3.msra.mxu0 %v219_v26 }
  0x16   :  { %391 = vmatprep.subr.mxu1 %v466_v1  ;;  %416 = vmatprep.subr.mxu0 %v466_v1  ;;  %p452_p4 = pnand %p451_p3, %p445_p0 }
  0x17   :  { %392 = vmatpush3.msra.mxu1 %v119_v16  ;;  %417 = vmatpush3.msra.mxu0 %v218_v27 }
  0x18   :  { %393 = vmatprep.subr.mxu1 %v466_v1  ;;  %418 = vmatprep.subr.mxu0 %v466_v1 }
  0x19   :  { %394 = vmatpush3.msra.mxu1 %v118_v17  ;;  %419 = vmatpush3.msra.mxu0 %v217_v28 }
  0x1a   :  { %395 = vmatprep.subr.mxu1 %v466_v1  ;;  %420 = vmatprep.subr.mxu0 %v466_v1 }
  0x1b   :  { %396 = vmatpush3.msra.mxu1 %v117_v18  ;;  %421 = vmatpush3.msra.mxu0 %v216_v29 }
  0x1c   :  { %397 = vmatprep.subr.mxu1 %v466_v1  ;;  %422 = vmatprep.subr.mxu0 %v466_v1 }
  0x1d   :  { %398 = vmatpush3.msra.mxu1 %v116_v19  ;;  %423 = vmatpush3.msra.mxu0 %v215_v30 }
  0x1e   :  { %399 = vmatprep.subr.mxu1 %v466_v1  ;;  %424 = vmatprep.subr.mxu0 %v466_v1 }
  0x1f   :  { %400 = vmatpush3.msra.mxu1 %v115_v20  ;;  %425 = vmatpush3.msra.mxu0 %v214_v31 }
  0x20   :  { %401 = vmatprep.subr.mxu1 %v466_v1  ;;  %426 = vmatprep.subr.mxu0 %v466_v1 }
  0x21   :  { %402 = vmatpush3.msra.mxu1 %v114_v21  ;;  %427 = vmatpush3.msra.mxu0 %v213_v32 }
  0x22   :  { %428 = vmatprep.subr.mxu0 %v466_v1 }
  0x23   :  { %429 = vmatpush3.msra.mxu0 %v212_v33 }
  0x24   :  { %430 = vmatprep.subr.mxu0 %v466_v1 }
  0x25   :  { %431 = vmatpush3.msra.mxu0 %v211_v34 }
  0x26   :  { %432 = vmatprep.subr.mxu0 %v466_v1 }
  0x27   :  { %433 = vmatpush3.msra.mxu0 %v210_v40 }
  0x28   :  { %434 = vmatprep.subr.mxu0 %v466_v1 }
  0x29   :  { %435 = vmatpush3.msra.mxu0 %v209_v41 }
  0x2a   :  { %436 = vmatprep.subr.mxu0 %v466_v1 }
  0x2b   :  { %437 = vmatpush3.msra.mxu0 %v208_v42 }
  0xc9   :  { %v109_v36 = vpop.f32.mrf.mxu0 }
  0xca   :  { %v110_v37 = vadd.f32 %v317_v35, %v109_v36 }
  0xcb   :  { %v370_v38 = vpop.f32.mrf.mxu0 }
  0xcc   :  { %v113_v39 = vmax.f32 %v110_v37, 0.0 }
  0xce   :  { %404 = vmatmul.mubr.f32.vlgmr.msra.gmra.mxu1 %v113_v39 }
 0x18e   :  { %v203_v44 = vpop.f32.mrf.mxu1 }
 0x18f   :  { %v204_v45 = vadd.f32 %v319_v43, %v203_v44 }
 0x190   :  { %v405_v46 = vpop.f32.mrf.mxu1 }
 0x191   :  { %v207_v47 = vmax.f32 %v204_v45, 0.0 }
 0x193   :  { %439 = vmatmul.mubr.f32.vlgmr.msra.gmra.mxu0 %v207_v47 }
 0x253   :  { %v297_v49 = vpop.f32.mrf.mxu0 }
 0x254   :  { %v298_v50 = vadd.f32 %v320_v48, %v297_v49 }
 0x255   :  { %v440_v51 = vpop.f32.mrf.mxu0 }
 0x256   :  { %302 = vst.msk [vmem:[#allocation2] sm:$0xff] %vm301_vm2, %v298_v50 }
 0x257   :  { %455 = shalt.err (!%p452_p4)
}
 0x258   :  { %312 = dma.vmem_to_hbm [thread:$0]  %s310_s27, 128, %s681_s7, [#allocation3]  }
 0x259   :  { %464 = dma.done.wait [#allocation3], 128  }
 0x25a   :  { %465 = vsyncadd [#allocation3], 4294967168 }
 0x25b   :  { %316 = vsyncpa [#allocation3], 1 }

</bundles_post_ra>
